<compile_context>
chip_gen: v7x
topology: tpu7x:2x2x1
jax: 0.10.0
libtpu: 0.0.40
codegen_flags: <defaults>
</compile_context>

<pallas_src>
import numpy as np
import jax
import jax.numpy as jnp
from jax import lax
from jax.experimental import pallas as pl
from jax.experimental.pallas import tpu as pltpu


def span_embed_kernel(ctx_ref, se_ref, len_emb_ref,
                      scale_w_ref, scale_b_ref,
                      w_out_ref, b_out_ref,
                      out_ref):
    Bb, W, H = ctx_ref.shape
    S = se_ref.shape[1]

    scale_w = scale_w_ref[...]                      # (1, H) f32
    scale_b = scale_b_ref[0]                        # scalar f32 (SMEM)
    w_out = w_out_ref[...]                          # (D+3H, H) bf16
    b_out = b_out_ref[...]                          # (1, H) f32
    neg_inf = jnp.float32(-1.0e9)

    cats = []
    for i in range(Bb):                             # static unroll over the batch block
        ctx = ctx_ref[i]                            # (W, H) f32

        # scores = scale(context).squeeze(-1): VPU multiply + lane reduce (no MXU matvec)
        scores = jnp.sum(ctx * scale_w, axis=-1) + scale_b      # (W,) f32
        scores_row = scores.reshape(1, W)                       # (1, W)

        se = se_ref[i]                              # (S, 2) int32
        start = se[:, 0:1]                          # (S, 1)
        end = se[:, 1:2]                            # (S, 1)
        w_ids = lax.broadcasted_iota(jnp.int32, (S, W), 1)

        in_span = (w_ids >= start) & (w_ids < end)               # (S, W) bool

        # masked span softmax, all f32
        k = jnp.where(in_span, scores_row, neg_inf)
        k = k - jnp.max(k, axis=-1, keepdims=True)
        p = jnp.exp(k)
        k = p * pl.reciprocal(jnp.sum(p, axis=-1, keepdims=True), approx=True)

        s_map = (w_ids == start).astype(jnp.float32)             # (S, W)
        e_map = (w_ids == end).astype(jnp.float32)               # (S, W)

        # fuse the 3 span-pooling matmuls into one (3S, W) @ (W, H) MXU pass
        maps = jnp.concatenate([k, s_map, e_map], axis=0)        # (3S, W) f32
        pooled = jnp.dot(maps.astype(jnp.bfloat16),
                         ctx.astype(jnp.bfloat16),
                         preferred_element_type=jnp.float32)     # (3S, H) f32

        cat = jnp.concatenate(
            [len_emb_ref[i], pooled[:S], pooled[S:2 * S], pooled[2 * S:]],
            axis=-1)                                             # (S, D+3H) f32
        cats.append(cat)

    cat_all = cats[0] if Bb == 1 else jnp.concatenate(cats, axis=0)   # (Bb*S, D+3H)

    # single span_out linear for the whole batch block + bias + relu
    out = jnp.dot(cat_all.astype(jnp.bfloat16), w_out,
                  preferred_element_type=jnp.float32) + b_out         # (Bb*S, H)
    out = jnp.maximum(out, 0.0)

    for i in range(Bb):
        out_ref[i] = out[i * S:(i + 1) * S, :].astype(out_ref.dtype)


def span_embed_forward(context, start_idx, end_idx, len_embed,
                       scale_w, scale_b, w_out, b_out, *, block_b=None):
    B, W, H = context.shape
    S = start_idx.shape[1]
    D = len_embed.shape[-1]

    if block_b is None:                      # batch elements per grid step
        block_b = 1
        for cand in (4, 2, 1):
            if B % cand == 0:
                block_b = cand
                break
    assert B % block_b == 0
    Bb = block_b

    # start/end combined into a single small int32 block (fewer padded tiles / DMAs)
    se = jnp.concatenate([start_idx.astype(jnp.int32),
                          end_idx.astype(jnp.int32)], axis=-1)        # (B, S, 2)

    scale_w_row = scale_w.reshape(1, H).astype(jnp.float32)           # (1, H)
    scale_b_s = scale_b.reshape(1).astype(jnp.float32)                # (1,) -> SMEM
    w_out_bf16 = w_out.astype(jnp.bfloat16)                           # (D+3H, H)
    b_out_row = b_out.reshape(1, H).astype(jnp.float32)               # (1, H)

    in_specs = [
        pl.BlockSpec((Bb, W, H), lambda b: (b, 0, 0)),                # context block
        pl.BlockSpec((Bb, S, 2), lambda b: (b, 0, 0)),                # start/end
        pl.BlockSpec((Bb, S, D), lambda b: (b, 0, 0)),                # len_embed
        pl.BlockSpec((1, H), lambda b: (0, 0)),                       # scale weight row
        pl.BlockSpec(memory_space=pltpu.MemorySpace.SMEM),            # scale bias scalar
        # TODO(synk): for production-size H on v7x, add pipeline_mode=pl.Buffered(1)
        # here and set vmem_limit_bytes (64 MiB physical VMEM on v7x).
        pl.BlockSpec((D + 3 * H, H), lambda b: (0, 0)),               # span_out weight
        pl.BlockSpec((1, H), lambda b: (0, 0)),                       # span_out bias
    ]
    out_spec = pl.BlockSpec((Bb, S, H), lambda b: (b, 0, 0))

    return pl.pallas_call(
        span_embed_kernel,
        out_shape=jax.ShapeDtypeStruct((B, S, H), jnp.float32),
        grid_spec=pltpu.PrefetchScalarGridSpec(
            num_scalar_prefetch=0,
            grid=(B // Bb,),
            in_specs=in_specs,
            out_specs=out_spec),
        compiler_params=pltpu.CompilerParams(
            dimension_semantics=("parallel",)),
    )(context, se, len_embed, scale_w_row, scale_b_s, w_out_bf16, b_out_row)


def reference_forward(context, start_idx, end_idx, len_embed,
                      scale_w, scale_b, w_out, b_out):
    B, W, H = context.shape
    scores = (context @ scale_w + scale_b)[..., 0]                    # (B, W)
    w_ids = jnp.arange(W)[None, None, :]
    e_map = ((w_ids >= start_idx) & (w_ids < end_idx)).astype(jnp.float32)
    s_map = (w_ids == start_idx).astype(jnp.float32)
    en_map = (w_ids == end_idx).astype(jnp.float32)
    k = e_map * scores[:, None, :]
    k = jnp.where(e_map > 0.0, k, -1000000000.0)
    k = jax.nn.softmax(k, axis=-1)
    embed = jnp.einsum('bsw,bwh->bsh', k, context)
    st = jnp.einsum('bsw,bwh->bsh', s_map, context)
    en = jnp.einsum('bsw,bwh->bsh', en_map, context)
    cat = jnp.concatenate([len_embed, embed, st, en], axis=-1)
    return jax.nn.relu(cat @ w_out + b_out)


if __name__ == "__main__":
    # batch, word_size, hidden, num spans, dis_size
    B, W, H, S, D = 8, 16, 32, 8, 16

    key = jax.random.PRNGKey(0)
    k1, k2, k3, k4, k5, k6, k7 = jax.random.split(key, 7)

    context = jax.random.normal(k1, (B, W, H), dtype=jnp.float32)

    start = jax.random.randint(k2, (B, S), 0, W - 2)
    length = jax.random.randint(k3, (B, S), 1, 6)
    end = jnp.minimum(start + length, W)
    # build an 'info' tensor mirroring the module interface (cols 2/3 = start/end)
    info = jnp.stack([jnp.zeros_like(start), jnp.zeros_like(start), start, end],
                     axis=-1).astype(jnp.int32)                        # (B, S, 4)

    # parameters (deterministic)
    emb_table = 0.1 * jax.random.normal(k4, (20, D), dtype=jnp.float32)   # span_len_embed
    scale_w = 0.1 * jax.random.normal(k5, (H, 1), dtype=jnp.float32)      # scale: Linear(H,1)
    scale_b = jnp.zeros((1, 1), dtype=jnp.float32)
    w_out = 0.05 * jax.random.normal(k6, (D + 3 * H, H), dtype=jnp.float32)  # span_out
    b_out = 0.01 * jax.random.normal(k7, (1, H), dtype=jnp.float32)

    # TODO(synk): self.dis2idx is not defined in the module's __init__; using the
    # standard log-distance bucket table from this codebase family.
    dis2idx = np.zeros(1000, dtype=np.int64)
    dis2idx[1] = 1; dis2idx[2:] = 2; dis2idx[4:] = 3; dis2idx[8:] = 4; dis2idx[16:] = 5
    dis2idx[32:] = 6; dis2idx[64:] = 7; dis2idx[128:] = 8; dis2idx[256:] = 9

    start_i = info[..., 2][..., None]                                  # (B, S, 1)
    end_i = info[..., 3][..., None]                                    # (B, S, 1)
    dist = np.clip(np.asarray(end - start), 0, 999)
    len_idx = jnp.asarray(dis2idx[dist])
    len_embed = emb_table[len_idx]                                     # (B, S, D) gather glue

    out = span_embed_forward(context, start_i, end_i, len_embed,
                             scale_w, scale_b, w_out, b_out)
    out = jax.block_until_ready(out)

    ref = reference_forward(context, start_i, end_i, len_embed,
                            scale_w, scale_b, w_out, b_out)
    # kernel uses bf16 MXU operands with f32 accumulation -> slightly looser tolerance
    np.testing.assert_allclose(np.asarray(out), np.asarray(ref), rtol=2e-2, atol=2e-2)

    print("KERNEL_OK")
</pallas_src>

<mosaic_0001>
module attributes {stable_mosaic.version = 11 : i64} {
  func.func @span_embed_kernel(%arg0: i32, %arg1: memref<4x16x32xf32, #tpu.memory_space<vmem>>, %arg2: memref<4x8x2xi32, #tpu.memory_space<vmem>>, %arg3: memref<4x8x16xf32, #tpu.memory_space<vmem>>, %arg4: memref<1x32xf32, #tpu.memory_space<vmem>>, %arg5: memref<1xf32, #tpu.memory_space<smem>>, %arg6: memref<112x32xbf16, #tpu.memory_space<vmem>>, %arg7: memref<1x32xf32, #tpu.memory_space<vmem>>, %arg8: memref<4x8x32xf32, #tpu.memory_space<vmem>>) attributes {dimension_semantics = [#tpu.dimension_semantics<parallel>], iteration_bounds = array<i64: 2>, scalar_prefetch = 0 : i64, scratch_operands = 0 : i64, tpu.core_type = #tpu.core_type<tc>, window_params = [{transform_indices = @transform_0, window_bounds = array<i64: 4, 16, 32>}, {transform_indices = @transform_1, window_bounds = array<i64: 4, 8, 2>}, {transform_indices = @transform_2, window_bounds = array<i64: 4, 8, 16>}, {pipeline_mode = #tpu.pipeline_mode<synchronous>, transform_indices = @transform_3, window_bounds = array<i64: 1, 32>}, {transform_indices = @transform_4, window_bounds = array<i64: 1>}, {pipeline_mode = #tpu.pipeline_mode<synchronous>, transform_indices = @transform_5, window_bounds = array<i64: 112, 32>}, {pipeline_mode = #tpu.pipeline_mode<synchronous>, transform_indices = @transform_6, window_bounds = array<i64: 1, 32>}, {transform_indices = @transform_7, window_bounds = array<i64: 4, 8, 32>}]} {
    %c0 = arith.constant 0 : index
    %c0_0 = arith.constant 0 : index
    %0 = vector.load %arg4[%c0, %c0_0] : memref<1x32xf32, #tpu.memory_space<vmem>>, vector<1x32xf32>
    %c0_1 = arith.constant 0 : index
    %1 = memref.load %arg5[%c0_1] : memref<1xf32, #tpu.memory_space<smem>>
    %c0_2 = arith.constant 0 : index
    %c0_3 = arith.constant 0 : index
    %2 = vector.load %arg6[%c0_2, %c0_3] : memref<112x32xbf16, #tpu.memory_space<vmem>>, vector<112x32xbf16>
    %c0_4 = arith.constant 0 : index
    %c0_5 = arith.constant 0 : index
    %3 = vector.load %arg7[%c0_4, %c0_5] : memref<1x32xf32, #tpu.memory_space<vmem>>, vector<1x32xf32>
    %c0_6 = arith.constant 0 : index
    %c0_7 = arith.constant 0 : index
    %c0_8 = arith.constant 0 : index
    %4 = vector.load %arg1[%c0_6, %c0_7, %c0_8] : memref<4x16x32xf32, #tpu.memory_space<vmem>>, vector<1x16x32xf32>
    %5 = vector.shape_cast %4 : vector<1x16x32xf32> to vector<16x32xf32>
    %6 = vector.broadcast %0 : vector<1x32xf32> to vector<16x32xf32>
    %7 = arith.mulf %5, %6 : vector<16x32xf32>
    %cst = arith.constant dense<0.000000e+00> : vector<16xf32>
    %8 = vector.multi_reduction <add>, %7, %cst [1] : vector<16x32xf32> to vector<16xf32>
    %9 = vector.broadcast %1 : f32 to vector<16xf32>
    %10 = arith.addf %8, %9 : vector<16xf32>
    %11 = vector.shape_cast %10 : vector<16xf32> to vector<1x16xf32>
    %c0_9 = arith.constant 0 : index
    %c0_10 = arith.constant 0 : index
    %c0_11 = arith.constant 0 : index
    %12 = vector.load %arg2[%c0_9, %c0_10, %c0_11] : memref<4x8x2xi32, #tpu.memory_space<vmem>>, vector<1x8x2xi32>
    %13 = vector.shape_cast %12 : vector<1x8x2xi32> to vector<8x2xi32>
    %14 = vector.extract_strided_slice %13 {offsets = [0, 0], sizes = [8, 1], strides = [1, 1]} : vector<8x2xi32> to vector<8x1xi32>
    %15 = vector.extract_strided_slice %13 {offsets = [0, 1], sizes = [8, 1], strides = [1, 1]} : vector<8x2xi32> to vector<8x1xi32>
    %16 = tpu.iota {dimensions = array<i32: 1>} : vector<8x16xi32>
    %17 = vector.broadcast %14 : vector<8x1xi32> to vector<8x16xi32>
    %18 = arith.cmpi sge, %16, %17 : vector<8x16xi32>
    %19 = vector.broadcast %15 : vector<8x1xi32> to vector<8x16xi32>
    %20 = arith.cmpi slt, %16, %19 : vector<8x16xi32>
    %21 = arith.andi %18, %20 : vector<8x16xi1>
    %cst_12 = arith.constant -1.000000e+09 : f32
    %22 = vector.shape_cast %11 : vector<1x16xf32> to vector<1x16xf32>
    %23 = vector.broadcast %22 : vector<1x16xf32> to vector<8x16xf32>
    %24 = vector.broadcast %cst_12 : f32 to vector<8x16xf32>
    %25 = arith.select %21, %23, %24 : vector<8x16xi1>, vector<8x16xf32>
    %cst_13 = arith.constant dense<0xFF800000> : vector<8xf32>
    %26 = vector.multi_reduction <maximumf>, %25, %cst_13 [1] : vector<8x16xf32> to vector<8xf32>
    %27 = vector.shape_cast %26 : vector<8xf32> to vector<8x1xf32>
    %28 = vector.broadcast %27 : vector<8x1xf32> to vector<8x16xf32>
    %29 = arith.subf %25, %28 : vector<8x16xf32>
    %30 = math.exp %29 : vector<8x16xf32>
    %cst_14 = arith.constant dense<0.000000e+00> : vector<8xf32>
    %31 = vector.multi_reduction <add>, %30, %cst_14 [1] : vector<8x16xf32> to vector<8xf32>
    %32 = vector.shape_cast %31 : vector<8xf32> to vector<8x1xf32>
    %33 = tpu.reciprocal %32 {approx = true} : vector<8x1xf32> -> vector<8x1xf32>
    %34 = vector.broadcast %33 : vector<8x1xf32> to vector<8x16xf32>
    %35 = arith.mulf %30, %34 : vector<8x16xf32>
    %36 = vector.broadcast %14 : vector<8x1xi32> to vector<8x16xi32>
    %37 = arith.cmpi eq, %16, %36 : vector<8x16xi32>
    %38 = arith.extui %37 : vector<8x16xi1> to vector<8x16xi32>
    %39 = arith.sitofp %38 : vector<8x16xi32> to vector<8x16xf32>
    %40 = vector.broadcast %15 : vector<8x1xi32> to vector<8x16xi32>
    %41 = arith.cmpi eq, %16, %40 : vector<8x16xi32>
    %42 = arith.extui %41 : vector<8x16xi1> to vector<8x16xi32>
    %43 = arith.sitofp %42 : vector<8x16xi32> to vector<8x16xf32>
    %44 = tpu.concatenate %35, %39, %43 in 0 : vector<8x16xf32>, vector<8x16xf32>, vector<8x16xf32> -> vector<24x16xf32>
    %45 = arith.truncf %44 : vector<24x16xf32> to vector<24x16xbf16>
    %46 = arith.truncf %5 : vector<16x32xf32> to vector<16x32xbf16>
    %cst_15 = arith.constant dense<0.000000e+00> : vector<24x32xf32>
    %47 = tpu.matmul %45, %46, %cst_15 {dimension_numbers = #tpu.dot_dimension_numbers<[1], [0], [0], [1], [0, 0, 1, 1], [], []>} : vector<24x16xbf16>, vector<16x32xbf16>, vector<24x32xf32> -> vector<24x32xf32>
    %c0_16 = arith.constant 0 : index
    %c0_17 = arith.constant 0 : index
    %c0_18 = arith.constant 0 : index
    %48 = vector.load %arg3[%c0_16, %c0_17, %c0_18] : memref<4x8x16xf32, #tpu.memory_space<vmem>>, vector<1x8x16xf32>
    %49 = vector.shape_cast %48 : vector<1x8x16xf32> to vector<8x16xf32>
    %50 = vector.extract_strided_slice %47 {offsets = [0, 0], sizes = [8, 32], strides = [1, 1]} : vector<24x32xf32> to vector<8x32xf32>
    %51 = vector.extract_strided_slice %47 {offsets = [8, 0], sizes = [8, 32], strides = [1, 1]} : vector<24x32xf32> to vector<8x32xf32>
    %52 = vector.extract_strided_slice %47 {offsets = [16, 0], sizes = [8, 32], strides = [1, 1]} : vector<24x32xf32> to vector<8x32xf32>
    %53 = tpu.concatenate %49, %50, %51, %52 in 1 : vector<8x16xf32>, vector<8x32xf32>, vector<8x32xf32>, vector<8x32xf32> -> vector<8x112xf32>
    %c1 = arith.constant 1 : index
    %c0_19 = arith.constant 0 : index
    %c0_20 = arith.constant 0 : index
    %54 = vector.load %arg1[%c1, %c0_19, %c0_20] : memref<4x16x32xf32, #tpu.memory_space<vmem>>, vector<1x16x32xf32>
    %55 = vector.shape_cast %54 : vector<1x16x32xf32> to vector<16x32xf32>
    %56 = vector.broadcast %0 : vector<1x32xf32> to vector<16x32xf32>
    %57 = arith.mulf %55, %56 : vector<16x32xf32>
    %cst_21 = arith.constant dense<0.000000e+00> : vector<16xf32>
    %58 = vector.multi_reduction <add>, %57, %cst_21 [1] : vector<16x32xf32> to vector<16xf32>
    %59 = vector.broadcast %1 : f32 to vector<16xf32>
    %60 = arith.addf %58, %59 : vector<16xf32>
    %61 = vector.shape_cast %60 : vector<16xf32> to vector<1x16xf32>
    %c1_22 = arith.constant 1 : index
    %c0_23 = arith.constant 0 : index
    %c0_24 = arith.constant 0 : index
    %62 = vector.load %arg2[%c1_22, %c0_23, %c0_24] : memref<4x8x2xi32, #tpu.memory_space<vmem>>, vector<1x8x2xi32>
    %63 = vector.shape_cast %62 : vector<1x8x2xi32> to vector<8x2xi32>
    %64 = vector.extract_strided_slice %63 {offsets = [0, 0], sizes = [8, 1], strides = [1, 1]} : vector<8x2xi32> to vector<8x1xi32>
    %65 = vector.extract_strided_slice %63 {offsets = [0, 1], sizes = [8, 1], strides = [1, 1]} : vector<8x2xi32> to vector<8x1xi32>
    %66 = tpu.iota {dimensions = array<i32: 1>} : vector<8x16xi32>
    %67 = vector.broadcast %64 : vector<8x1xi32> to vector<8x16xi32>
    %68 = arith.cmpi sge, %66, %67 : vector<8x16xi32>
    %69 = vector.broadcast %65 : vector<8x1xi32> to vector<8x16xi32>
    %70 = arith.cmpi slt, %66, %69 : vector<8x16xi32>
    %71 = arith.andi %68, %70 : vector<8x16xi1>
    %cst_25 = arith.constant -1.000000e+09 : f32
    %72 = vector.shape_cast %61 : vector<1x16xf32> to vector<1x16xf32>
    %73 = vector.broadcast %72 : vector<1x16xf32> to vector<8x16xf32>
    %74 = vector.broadcast %cst_25 : f32 to vector<8x16xf32>
    %75 = arith.select %71, %73, %74 : vector<8x16xi1>, vector<8x16xf32>
    %cst_26 = arith.constant dense<0xFF800000> : vector<8xf32>
    %76 = vector.multi_reduction <maximumf>, %75, %cst_26 [1] : vector<8x16xf32> to vector<8xf32>
    %77 = vector.shape_cast %76 : vector<8xf32> to vector<8x1xf32>
    %78 = vector.broadcast %77 : vector<8x1xf32> to vector<8x16xf32>
    %79 = arith.subf %75, %78 : vector<8x16xf32>
    %80 = math.exp %79 : vector<8x16xf32>
    %cst_27 = arith.constant dense<0.000000e+00> : vector<8xf32>
    %81 = vector.multi_reduction <add>, %80, %cst_27 [1] : vector<8x16xf32> to vector<8xf32>
    %82 = vector.shape_cast %81 : vector<8xf32> to vector<8x1xf32>
    %83 = tpu.reciprocal %82 {approx = true} : vector<8x1xf32> -> vector<8x1xf32>
    %84 = vector.broadcast %83 : vector<8x1xf32> to vector<8x16xf32>
    %85 = arith.mulf %80, %84 : vector<8x16xf32>
    %86 = vector.broadcast %64 : vector<8x1xi32> to vector<8x16xi32>
    %87 = arith.cmpi eq, %66, %86 : vector<8x16xi32>
    %88 = arith.extui %87 : vector<8x16xi1> to vector<8x16xi32>
    %89 = arith.sitofp %88 : vector<8x16xi32> to vector<8x16xf32>
    %90 = vector.broadcast %65 : vector<8x1xi32> to vector<8x16xi32>
    %91 = arith.cmpi eq, %66, %90 : vector<8x16xi32>
    %92 = arith.extui %91 : vector<8x16xi1> to vector<8x16xi32>
    %93 = arith.sitofp %92 : vector<8x16xi32> to vector<8x16xf32>
    %94 = tpu.concatenate %85, %89, %93 in 0 : vector<8x16xf32>, vector<8x16xf32>, vector<8x16xf32> -> vector<24x16xf32>
    %95 = arith.truncf %94 : vector<24x16xf32> to vector<24x16xbf16>
    %96 = arith.truncf %55 : vector<16x32xf32> to vector<16x32xbf16>
    %cst_28 = arith.constant dense<0.000000e+00> : vector<24x32xf32>
    %97 = tpu.matmul %95, %96, %cst_28 {dimension_numbers = #tpu.dot_dimension_numbers<[1], [0], [0], [1], [0, 0, 1, 1], [], []>} : vector<24x16xbf16>, vector<16x32xbf16>, vector<24x32xf32> -> vector<24x32xf32>
    %c1_29 = arith.constant 1 : index
    %c0_30 = arith.constant 0 : index
    %c0_31 = arith.constant 0 : index
    %98 = vector.load %arg3[%c1_29, %c0_30, %c0_31] : memref<4x8x16xf32, #tpu.memory_space<vmem>>, vector<1x8x16xf32>
    %99 = vector.shape_cast %98 : vector<1x8x16xf32> to vector<8x16xf32>
    %100 = vector.extract_strided_slice %97 {offsets = [0, 0], sizes = [8, 32], strides = [1, 1]} : vector<24x32xf32> to vector<8x32xf32>
    %101 = vector.extract_strided_slice %97 {offsets = [8, 0], sizes = [8, 32], strides = [1, 1]} : vector<24x32xf32> to vector<8x32xf32>
    %102 = vector.extract_strided_slice %97 {offsets = [16, 0], sizes = [8, 32], strides = [1, 1]} : vector<24x32xf32> to vector<8x32xf32>
    %103 = tpu.concatenate %99, %100, %101, %102 in 1 : vector<8x16xf32>, vector<8x32xf32>, vector<8x32xf32>, vector<8x32xf32> -> vector<8x112xf32>
    %c2 = arith.constant 2 : index
    %c0_32 = arith.constant 0 : index
    %c0_33 = arith.constant 0 : index
    %104 = vector.load %arg1[%c2, %c0_32, %c0_33] : memref<4x16x32xf32, #tpu.memory_space<vmem>>, vector<1x16x32xf32>
    %105 = vector.shape_cast %104 : vector<1x16x32xf32> to vector<16x32xf32>
    %106 = vector.broadcast %0 : vector<1x32xf32> to vector<16x32xf32>
    %107 = arith.mulf %105, %106 : vector<16x32xf32>
    %cst_34 = arith.constant dense<0.000000e+00> : vector<16xf32>
    %108 = vector.multi_reduction <add>, %107, %cst_34 [1] : vector<16x32xf32> to vector<16xf32>
    %109 = vector.broadcast %1 : f32 to vector<16xf32>
    %110 = arith.addf %108, %109 : vector<16xf32>
    %111 = vector.shape_cast %110 : vector<16xf32> to vector<1x16xf32>
    %c2_35 = arith.constant 2 : index
    %c0_36 = arith.constant 0 : index
    %c0_37 = arith.constant 0 : index
    %112 = vector.load %arg2[%c2_35, %c0_36, %c0_37] : memref<4x8x2xi32, #tpu.memory_space<vmem>>, vector<1x8x2xi32>
    %113 = vector.shape_cast %112 : vector<1x8x2xi32> to vector<8x2xi32>
    %114 = vector.extract_strided_slice %113 {offsets = [0, 0], sizes = [8, 1], strides = [1, 1]} : vector<8x2xi32> to vector<8x1xi32>
    %115 = vector.extract_strided_slice %113 {offsets = [0, 1], sizes = [8, 1], strides = [1, 1]} : vector<8x2xi32> to vector<8x1xi32>
    %116 = tpu.iota {dimensions = array<i32: 1>} : vector<8x16xi32>
    %117 = vector.broadcast %114 : vector<8x1xi32> to vector<8x16xi32>
    %118 = arith.cmpi sge, %116, %117 : vector<8x16xi32>
    %119 = vector.broadcast %115 : vector<8x1xi32> to vector<8x16xi32>
    %120 = arith.cmpi slt, %116, %119 : vector<8x16xi32>
    %121 = arith.andi %118, %120 : vector<8x16xi1>
    %cst_38 = arith.constant -1.000000e+09 : f32
    %122 = vector.shape_cast %111 : vector<1x16xf32> to vector<1x16xf32>
    %123 = vector.broadcast %122 : vector<1x16xf32> to vector<8x16xf32>
    %124 = vector.broadcast %cst_38 : f32 to vector<8x16xf32>
    %125 = arith.select %121, %123, %124 : vector<8x16xi1>, vector<8x16xf32>
    %cst_39 = arith.constant dense<0xFF800000> : vector<8xf32>
    %126 = vector.multi_reduction <maximumf>, %125, %cst_39 [1] : vector<8x16xf32> to vector<8xf32>
    %127 = vector.shape_cast %126 : vector<8xf32> to vector<8x1xf32>
    %128 = vector.broadcast %127 : vector<8x1xf32> to vector<8x16xf32>
    %129 = arith.subf %125, %128 : vector<8x16xf32>
    %130 = math.exp %129 : vector<8x16xf32>
    %cst_40 = arith.constant dense<0.000000e+00> : vector<8xf32>
    %131 = vector.multi_reduction <add>, %130, %cst_40 [1] : vector<8x16xf32> to vector<8xf32>
    %132 = vector.shape_cast %131 : vector<8xf32> to vector<8x1xf32>
    %133 = tpu.reciprocal %132 {approx = true} : vector<8x1xf32> -> vector<8x1xf32>
    %134 = vector.broadcast %133 : vector<8x1xf32> to vector<8x16xf32>
    %135 = arith.mulf %130, %134 : vector<8x16xf32>
    %136 = vector.broadcast %114 : vector<8x1xi32> to vector<8x16xi32>
    %137 = arith.cmpi eq, %116, %136 : vector<8x16xi32>
    %138 = arith.extui %137 : vector<8x16xi1> to vector<8x16xi32>
    %139 = arith.sitofp %138 : vector<8x16xi32> to vector<8x16xf32>
    %140 = vector.broadcast %115 : vector<8x1xi32> to vector<8x16xi32>
    %141 = arith.cmpi eq, %116, %140 : vector<8x16xi32>
    %142 = arith.extui %141 : vector<8x16xi1> to vector<8x16xi32>
    %143 = arith.sitofp %142 : vector<8x16xi32> to vector<8x16xf32>
    %144 = tpu.concatenate %135, %139, %143 in 0 : vector<8x16xf32>, vector<8x16xf32>, vector<8x16xf32> -> vector<24x16xf32>
    %145 = arith.truncf %144 : vector<24x16xf32> to vector<24x16xbf16>
    %146 = arith.truncf %105 : vector<16x32xf32> to vector<16x32xbf16>
    %cst_41 = arith.constant dense<0.000000e+00> : vector<24x32xf32>
    %147 = tpu.matmul %145, %146, %cst_41 {dimension_numbers = #tpu.dot_dimension_numbers<[1], [0], [0], [1], [0, 0, 1, 1], [], []>} : vector<24x16xbf16>, vector<16x32xbf16>, vector<24x32xf32> -> vector<24x32xf32>
    %c2_42 = arith.constant 2 : index
    %c0_43 = arith.constant 0 : index
    %c0_44 = arith.constant 0 : index
    %148 = vector.load %arg3[%c2_42, %c0_43, %c0_44] : memref<4x8x16xf32, #tpu.memory_space<vmem>>, vector<1x8x16xf32>
    %149 = vector.shape_cast %148 : vector<1x8x16xf32> to vector<8x16xf32>
    %150 = vector.extract_strided_slice %147 {offsets = [0, 0], sizes = [8, 32], strides = [1, 1]} : vector<24x32xf32> to vector<8x32xf32>
    %151 = vector.extract_strided_slice %147 {offsets = [8, 0], sizes = [8, 32], strides = [1, 1]} : vector<24x32xf32> to vector<8x32xf32>
    %152 = vector.extract_strided_slice %147 {offsets = [16, 0], sizes = [8, 32], strides = [1, 1]} : vector<24x32xf32> to vector<8x32xf32>
    %153 = tpu.concatenate %149, %150, %151, %152 in 1 : vector<8x16xf32>, vector<8x32xf32>, vector<8x32xf32>, vector<8x32xf32> -> vector<8x112xf32>
    %c3 = arith.constant 3 : index
    %c0_45 = arith.constant 0 : index
    %c0_46 = arith.constant 0 : index
    %154 = vector.load %arg1[%c3, %c0_45, %c0_46] : memref<4x16x32xf32, #tpu.memory_space<vmem>>, vector<1x16x32xf32>
    %155 = vector.shape_cast %154 : vector<1x16x32xf32> to vector<16x32xf32>
    %156 = vector.broadcast %0 : vector<1x32xf32> to vector<16x32xf32>
    %157 = arith.mulf %155, %156 : vector<16x32xf32>
    %cst_47 = arith.constant dense<0.000000e+00> : vector<16xf32>
    %158 = vector.multi_reduction <add>, %157, %cst_47 [1] : vector<16x32xf32> to vector<16xf32>
    %159 = vector.broadcast %1 : f32 to vector<16xf32>
    %160 = arith.addf %158, %159 : vector<16xf32>
    %161 = vector.shape_cast %160 : vector<16xf32> to vector<1x16xf32>
    %c3_48 = arith.constant 3 : index
    %c0_49 = arith.constant 0 : index
    %c0_50 = arith.constant 0 : index
    %162 = vector.load %arg2[%c3_48, %c0_49, %c0_50] : memref<4x8x2xi32, #tpu.memory_space<vmem>>, vector<1x8x2xi32>
    %163 = vector.shape_cast %162 : vector<1x8x2xi32> to vector<8x2xi32>
    %164 = vector.extract_strided_slice %163 {offsets = [0, 0], sizes = [8, 1], strides = [1, 1]} : vector<8x2xi32> to vector<8x1xi32>
    %165 = vector.extract_strided_slice %163 {offsets = [0, 1], sizes = [8, 1], strides = [1, 1]} : vector<8x2xi32> to vector<8x1xi32>
    %166 = tpu.iota {dimensions = array<i32: 1>} : vector<8x16xi32>
    %167 = vector.broadcast %164 : vector<8x1xi32> to vector<8x16xi32>
    %168 = arith.cmpi sge, %166, %167 : vector<8x16xi32>
    %169 = vector.broadcast %165 : vector<8x1xi32> to vector<8x16xi32>
    %170 = arith.cmpi slt, %166, %169 : vector<8x16xi32>
    %171 = arith.andi %168, %170 : vector<8x16xi1>
    %cst_51 = arith.constant -1.000000e+09 : f32
    %172 = vector.shape_cast %161 : vector<1x16xf32> to vector<1x16xf32>
    %173 = vector.broadcast %172 : vector<1x16xf32> to vector<8x16xf32>
    %174 = vector.broadcast %cst_51 : f32 to vector<8x16xf32>
    %175 = arith.select %171, %173, %174 : vector<8x16xi1>, vector<8x16xf32>
    %cst_52 = arith.constant dense<0xFF800000> : vector<8xf32>
    %176 = vector.multi_reduction <maximumf>, %175, %cst_52 [1] : vector<8x16xf32> to vector<8xf32>
    %177 = vector.shape_cast %176 : vector<8xf32> to vector<8x1xf32>
    %178 = vector.broadcast %177 : vector<8x1xf32> to vector<8x16xf32>
    %179 = arith.subf %175, %178 : vector<8x16xf32>
    %180 = math.exp %179 : vector<8x16xf32>
    %cst_53 = arith.constant dense<0.000000e+00> : vector<8xf32>
    %181 = vector.multi_reduction <add>, %180, %cst_53 [1] : vector<8x16xf32> to vector<8xf32>
    %182 = vector.shape_cast %181 : vector<8xf32> to vector<8x1xf32>
    %183 = tpu.reciprocal %182 {approx = true} : vector<8x1xf32> -> vector<8x1xf32>
    %184 = vector.broadcast %183 : vector<8x1xf32> to vector<8x16xf32>
    %185 = arith.mulf %180, %184 : vector<8x16xf32>
    %186 = vector.broadcast %164 : vector<8x1xi32> to vector<8x16xi32>
    %187 = arith.cmpi eq, %166, %186 : vector<8x16xi32>
    %188 = arith.extui %187 : vector<8x16xi1> to vector<8x16xi32>
    %189 = arith.sitofp %188 : vector<8x16xi32> to vector<8x16xf32>
    %190 = vector.broadcast %165 : vector<8x1xi32> to vector<8x16xi32>
    %191 = arith.cmpi eq, %166, %190 : vector<8x16xi32>
    %192 = arith.extui %191 : vector<8x16xi1> to vector<8x16xi32>
    %193 = arith.sitofp %192 : vector<8x16xi32> to vector<8x16xf32>
    %194 = tpu.concatenate %185, %189, %193 in 0 : vector<8x16xf32>, vector<8x16xf32>, vector<8x16xf32> -> vector<24x16xf32>
    %195 = arith.truncf %194 : vector<24x16xf32> to vector<24x16xbf16>
    %196 = arith.truncf %155 : vector<16x32xf32> to vector<16x32xbf16>
    %cst_54 = arith.constant dense<0.000000e+00> : vector<24x32xf32>
    %197 = tpu.matmul %195, %196, %cst_54 {dimension_numbers = #tpu.dot_dimension_numbers<[1], [0], [0], [1], [0, 0, 1, 1], [], []>} : vector<24x16xbf16>, vector<16x32xbf16>, vector<24x32xf32> -> vector<24x32xf32>
    %c3_55 = arith.constant 3 : index
    %c0_56 = arith.constant 0 : index
    %c0_57 = arith.constant 0 : index
    %198 = vector.load %arg3[%c3_55, %c0_56, %c0_57] : memref<4x8x16xf32, #tpu.memory_space<vmem>>, vector<1x8x16xf32>
    %199 = vector.shape_cast %198 : vector<1x8x16xf32> to vector<8x16xf32>
    %200 = vector.extract_strided_slice %197 {offsets = [0, 0], sizes = [8, 32], strides = [1, 1]} : vector<24x32xf32> to vector<8x32xf32>
    %201 = vector.extract_strided_slice %197 {offsets = [8, 0], sizes = [8, 32], strides = [1, 1]} : vector<24x32xf32> to vector<8x32xf32>
    %202 = vector.extract_strided_slice %197 {offsets = [16, 0], sizes = [8, 32], strides = [1, 1]} : vector<24x32xf32> to vector<8x32xf32>
    %203 = tpu.concatenate %199, %200, %201, %202 in 1 : vector<8x16xf32>, vector<8x32xf32>, vector<8x32xf32>, vector<8x32xf32> -> vector<8x112xf32>
    %204 = tpu.concatenate %53, %103, %153, %203 in 0 : vector<8x112xf32>, vector<8x112xf32>, vector<8x112xf32>, vector<8x112xf32> -> vector<32x112xf32>
    %205 = arith.truncf %204 : vector<32x112xf32> to vector<32x112xbf16>
    %cst_58 = arith.constant dense<0.000000e+00> : vector<32x32xf32>
    %206 = tpu.matmul %205, %2, %cst_58 {dimension_numbers = #tpu.dot_dimension_numbers<[1], [0], [0], [1], [0, 0, 1, 1], [], []>} : vector<32x112xbf16>, vector<112x32xbf16>, vector<32x32xf32> -> vector<32x32xf32>
    %207 = vector.broadcast %3 : vector<1x32xf32> to vector<32x32xf32>
    %208 = arith.addf %206, %207 : vector<32x32xf32>
    %cst_59 = arith.constant 0.000000e+00 : f32
    %209 = vector.broadcast %cst_59 : f32 to vector<32x32xf32>
    %210 = arith.maximumf %208, %209 : vector<32x32xf32>
    %211 = vector.extract_strided_slice %210 {offsets = [0, 0], sizes = [8, 32], strides = [1, 1]} : vector<32x32xf32> to vector<8x32xf32>
    %c0_60 = arith.constant 0 : index
    %c0_61 = arith.constant 0 : index
    %c0_62 = arith.constant 0 : index
    %212 = vector.load %arg8[%c0_60, %c0_61, %c0_62] : memref<4x8x32xf32, #tpu.memory_space<vmem>>, vector<1x8x32xf32>
    %213 = vector.shape_cast %212 : vector<1x8x32xf32> to vector<8x32xf32>
    %214 = vector.shape_cast %211 : vector<8x32xf32> to vector<1x8x32xf32>
    tpu.vector_store %arg8[%c0_60, %c0_61, %c0_62], %214 {strides = array<i32>} : memref<4x8x32xf32, #tpu.memory_space<vmem>>, vector<1x8x32xf32>,
    %215 = vector.extract_strided_slice %210 {offsets = [8, 0], sizes = [8, 32], strides = [1, 1]} : vector<32x32xf32> to vector<8x32xf32>
    %c1_63 = arith.constant 1 : index
    %c0_64 = arith.constant 0 : index
    %c0_65 = arith.constant 0 : index
    %216 = vector.load %arg8[%c1_63, %c0_64, %c0_65] : memref<4x8x32xf32, #tpu.memory_space<vmem>>, vector<1x8x32xf32>
    %217 = vector.shape_cast %216 : vector<1x8x32xf32> to vector<8x32xf32>
    %218 = vector.shape_cast %215 : vector<8x32xf32> to vector<1x8x32xf32>
    tpu.vector_store %arg8[%c1_63, %c0_64, %c0_65], %218 {strides = array<i32>} : memref<4x8x32xf32, #tpu.memory_space<vmem>>, vector<1x8x32xf32>,
    %219 = vector.extract_strided_slice %210 {offsets = [16, 0], sizes = [8, 32], strides = [1, 1]} : vector<32x32xf32> to vector<8x32xf32>
    %c2_66 = arith.constant 2 : index
    %c0_67 = arith.constant 0 : index
    %c0_68 = arith.constant 0 : index
    %220 = vector.load %arg8[%c2_66, %c0_67, %c0_68] : memref<4x8x32xf32, #tpu.memory_space<vmem>>, vector<1x8x32xf32>
    %221 = vector.shape_cast %220 : vector<1x8x32xf32> to vector<8x32xf32>
    %222 = vector.shape_cast %219 : vector<8x32xf32> to vector<1x8x32xf32>
    tpu.vector_store %arg8[%c2_66, %c0_67, %c0_68], %222 {strides = array<i32>} : memref<4x8x32xf32, #tpu.memory_space<vmem>>, vector<1x8x32xf32>,
    %223 = vector.extract_strided_slice %210 {offsets = [24, 0], sizes = [8, 32], strides = [1, 1]} : vector<32x32xf32> to vector<8x32xf32>
    %c3_69 = arith.constant 3 : index
    %c0_70 = arith.constant 0 : index
    %c0_71 = arith.constant 0 : index
    %224 = vector.load %arg8[%c3_69, %c0_70, %c0_71] : memref<4x8x32xf32, #tpu.memory_space<vmem>>, vector<1x8x32xf32>
    %225 = vector.shape_cast %224 : vector<1x8x32xf32> to vector<8x32xf32>
    %226 = vector.shape_cast %223 : vector<8x32xf32> to vector<1x8x32xf32>
    tpu.vector_store %arg8[%c3_69, %c0_70, %c0_71], %226 {strides = array<i32>} : memref<4x8x32xf32, #tpu.memory_space<vmem>>, vector<1x8x32xf32>,
    return
  }
  func.func @transform_0(%arg0: i32) -> (i32, i32, i32) {
    %c0_i32 = arith.constant 0 : i32
    %c0_i32_0 = arith.constant 0 : i32
    %c0_i32_1 = arith.constant 0 : i32
    return %arg0, %c0_i32, %c0_i32_0 : i32, i32, i32
  }
  func.func @transform_1(%arg0: i32) -> (i32, i32, i32) {
    %c0_i32 = arith.constant 0 : i32
    %c0_i32_0 = arith.constant 0 : i32
    %c0_i32_1 = arith.constant 0 : i32
    return %arg0, %c0_i32, %c0_i32_0 : i32, i32, i32
  }
  func.func @transform_2(%arg0: i32) -> (i32, i32, i32) {
    %c0_i32 = arith.constant 0 : i32
    %c0_i32_0 = arith.constant 0 : i32
    %c0_i32_1 = arith.constant 0 : i32
    return %arg0, %c0_i32, %c0_i32_0 : i32, i32, i32
  }
  func.func @transform_3(%arg0: i32) -> (i32, i32) {
    %c0_i32 = arith.constant 0 : i32
    %c0_i32_0 = arith.constant 0 : i32
    %c0_i32_1 = arith.constant 0 : i32
    return %c0_i32, %c0_i32_0 : i32, i32
  }
  func.func @transform_4(%arg0: i32) -> i32 {
    %c0_i32 = arith.constant 0 : i32
    %c0_i32_0 = arith.constant 0 : i32
    return %c0_i32 : i32
  }
  func.func @transform_5(%arg0: i32) -> (i32, i32) {
    %c0_i32 = arith.constant 0 : i32
    %c0_i32_0 = arith.constant 0 : i32
    %c0_i32_1 = arith.constant 0 : i32
    return %c0_i32, %c0_i32_0 : i32, i32
  }
  func.func @transform_6(%arg0: i32) -> (i32, i32) {
    %c0_i32 = arith.constant 0 : i32
    %c0_i32_0 = arith.constant 0 : i32
    %c0_i32_1 = arith.constant 0 : i32
    return %c0_i32, %c0_i32_0 : i32, i32
  }
  func.func @transform_7(%arg0: i32) -> (i32, i32, i32) {
    %c0_i32 = arith.constant 0 : i32
    %c0_i32_0 = arith.constant 0 : i32
    %c0_i32_1 = arith.constant 0 : i32
    return %arg0, %c0_i32, %c0_i32_0 : i32, i32, i32
  }
}

</mosaic_0001>

<bundles_post_ra>
// kernel: tpu_custom_call.1
= control target key start
LH: loop header
LB: loop body
LE: loop exit
PB: predicated region body
PF: predicated region fallthrough
CT: control target
= control target key end

     0   :  { %s1893_s0 = inlined_call_operand.vmem [shape: f32[8,16,32], index: 0, kind: input, shape index: {}]   ;;  %s1894_s1 = inlined_call_operand.vmem [shape: s32[8,8,2], index: 1, kind: input, shape index: {}]   ;;  %s1895_s2 = inlined_call_operand.hbm [shape: f32[8,8,16], index: 2, kind: input, shape index: {}]   ;;  %s1896_s3 = inlined_call_operand.vmem [shape: f32[1,32], index: 3, kind: input, shape index: {}]   ;;  %s1897_s4 = inlined_call_operand.<no memory space> [shape: f32[1], index: 4, kind: input, shape index: {}]   ;;  %s1898_s5 = inlined_call_operand.vmem [shape: bf16[112,32], index: 5, kind: input, shape index: {}]   ;;  %s1899_s6 = inlined_call_operand.vmem [shape: f32[1,32], index: 6, kind: input, shape index: {}]   ;;  %s1900_s7 = inlined_call_operand.hbm [shape: f32[8,8,32], index: 7, kind: output, shape index: {}]  }
   0x1   :  { %12 = sst [smem:[#allocation2]] %s1897_s4 }
   0x2   :  { %13 = vsyncpa [#allocation4], 0 }
   0x3   :  { %15 = vsyncpa [#allocation4 + $0x1], 0 }
   0x4   :  { %16 = vsyncpa [#allocation5], 0 }
   0x5   :  { %18 = vsyncpa [#allocation5 + $0x1], 0  ;;  %s1543_s26 = smov 0   ;;  %s1545_s27 = smov 0  }
   0x6   :  { %s1547_s28 = smov 0   ;;  %s1549_s29 = smov 0  }
   0x7 LB: > { %s1564_s4 = sadd.s32 4294967295, %s1486_s29   ;;  %s1147_s30 = sadd.s32 4294967294, %s1486_s29   ;;  %s1486_s29 = sphi %s1549_s29, %s1913_s29   ;;  %s1482_s28 = sphi %s1547_s28, %s1912_s28   ;;  %s1478_s27 = sphi %s1545_s27, %s1911_s27   ;;  %s1474_s26 = sphi %s1543_s26, %s1910_s26  }
   0x8   : > { %s1568_s8 = sadd.s32 1, %s1486_s29   ;;  %s83_s9 = sadd.s32 1, %s1482_s28 }
   0x9   : > { %s80_s10 = ssub.s32 %s1486_s29, %s1568_s8  ;;  %p90_p0 = scmp.ne.s32.totalorder %s1482_s28, %s1478_s27 }
   0xa   : > { %p81_p1 = scmp.eq.s32.totalorder %s80_s10, 0  ;;  %p91_p2 = scmp.eq.s32.totalorder %s1486_s29, 0 }
   0xb   : > { %p96_p3 = scmp.ne.s32.totalorder %s1478_s27, %s1474_s26  ;;  %p97_p4 = scmp.eq.s32.totalorder %s1564_s4, 0 }
   0xc   : > { %s1580_s11 = scalar_select %p81_p1, %s1482_s28, %s83_s9  }
   0xd   : > { %p1582_p5 = por %p91_p2, %p90_p0  ;;  %p1586_p6 = por %p97_p4, %p96_p3 }
   0xe   : > { %p204_p7 = scmp.eq.s32.totalorder %s1564_s4, 1  ;;  %p210_p8 = scmp.eq.s32.totalorder %s1147_s30, 1 }
   0xf   : > { %p1286_p10 = scmp.lt.s32.totalorder %s1486_s29, 2  ;;  %s261_s16 = sand.u32 1, %s1482_s28  }
  0x10   : > { %p1593_p11 = por %p204_p7, %p90_p0  ;;  %p1597_p12 = por %p210_p8, %p96_p3 }
  0x11   : > { %s1208_s17 = sshll.u32 %s1486_s29, 9  ;;  %s1150_s18 = sshll.u32 %s261_s16, 5 }
  0x12   : > { %s1904_s14 = scalar_select %p1593_p11, 1, 0 }
  0x13   : > { %s1905_s15 = scalar_select %p1597_p12, 1, 0 }
  0x14   : > { %s1606_s21 = scalar_lea.hbm %s1895_s2, %s1208_s17  ;;  %s265_s22 = scalar_lea.vmem [#allocation3], %s1150_s18 }
  0x15   : > { %s272_s23 = sshll.u32 %s265_s22, 4  ;;  %p1610_p13 = pnand %p1286_p10, %p1582_p5  ;;  %s1614_s23 = int_to_ptr.vmem [resolvable:$true] %s272_s23 }
  0x16   : > { %s1616_s25 = scalar_lea.sflag [#allocation4], %s261_s16  ;;  %s1390_s30 = scalar_lea.hbm %s1606_s21, 512 }
  0x17   : > { %p1391_p0 = scmp.ne.s32.totalorder %s1606_s21, %s1390_s30  ;;  %p1392_p1 = pneg %p1610_p13 }
  0x18   : > { %s1395_s12 = scalar_lea.hbm %s1895_s2, 1024  ;;  %p1396_p4 = scmp.lt.u32.totalorder %s1606_s21, %s1895_s2 }
  0x19   : > { %p1393_p2 = pnand %p1392_p1, %p1391_p0  ;;  %p1397_p5 = scmp.lt.u32.totalorder %s1395_s12, %s1390_s30 }
  0x1a   : > { %p1399_p8 = scmp.lt.u32.totalorder %s1390_s30, %s1606_s21 }
  0x1b   : > { %p1394_p3 = pneg %p1393_p2  ;;  %p1398_p7 = por %p1397_p5, %p1396_p4 }
  0x1d   : > { %p1400_p10 = por %p1399_p8, %p1398_p7 }
  0x1f   : > { %p1401_p9 = pnand %p1400_p10, %p1394_p3 }
  0x21   : > { %1404 = shalt.err (!%p1401_p9)
}
  0x22   : > { %s1405_s16 = scalar_lea.vmem %s1614_s23, 512  ;;  %s1488_s19 = smov [#allocation3]  }
  0x23   : > { %p1406_p0 = scmp.ne.s32.totalorder %s1614_s23, %s1405_s16  ;;  %s1410_s20 = sshll.u32 %s1488_s19, 4  ;;  %s1411_s20 = int_to_ptr.vmem [resolvable:$false] %s1410_s20 }
  0x24   : > { %s1412_s22 = scalar_lea.vmem %s1411_s20, 1024  ;;  %p1413_p11 = scmp.lt.s32.totalorder %s1614_s23, %s1411_s20 }
  0x25   : > { %p1408_p2 = pnand %p1406_p0, %p1392_p1  ;;  %p1414_p4 = scmp.lt.s32.totalorder %s1412_s22, %s1405_s16 }
  0x27   : > { %p1409_p12 = pneg %p1408_p2  ;;  %p1415_p5 = por %p1414_p4, %p1413_p11 }
  0x29   : > { %p1416_p7 = pnand %p1415_p5, %p1409_p12 }
  0x2b   : > { %1419 = shalt.err (!%p1416_p7)
}
  0x2c   : > { %s1489_s30 = smov 128   ;;  %s1490_s9 = smov 8  }
  0x2d   : > { %1281 = dma.hbm_to_vmem [thread:$0]  (!%p1610_p13), %s1606_s21, 512, %s1614_s23, %s1616_s25, %s1489_s30, %s1489_s30, %s1490_s9  }
  0x2e   : > { %p1153_p9 = scmp.ge.s32.totalorder %s1486_s29, 1  ;;  %p280_p1 = scmp.lt.s32.totalorder %s1486_s29, 3 }
  0x30   : > { %p281_p3 = pnand %p1153_p9, %p280_p1 }
  0x31   : > { %s1647_s10 = sand.u32 (!%p281_p3), 1, %s1478_s27  }
  0x32   : > { %284 = sbr.rel (%p281_p3) target bundleno = 1222 (0x4c6), region = 48  ;;  %s1154_s12 = sshll.u32 (!%p281_p3), %s1647_s10, 5 }
  0x33   : > { %s287_s17 = scalar_lea.sflag (!%p281_p3), [#allocation4], %s1647_s10  ;;  %s1653_s18 = scalar_lea.vmem (!%p281_p3), [#allocation3], %s1154_s12 }
  0x39   : > { %1465 = dma.done.wait (%p1586_p6), %s287_s17, 512  }
  0x3a   : > { %1467 = vsyncadd (%p1586_p6), %s287_s17, 4294966784  ;;  %s1156_s21 = sshll.u32 %s1564_s4, 2  ;;  %v1491_v0 = vmov 1   ;;  %v1492_v1 = vmov 0   ;;  %v1161_v2 = vld [vmem:[%s1896_s3] ss:$0 sm:$0xff]  ;;  %v386_v31 = vlaneseq }
  0x3b   : > { %p333_p11 = scmp.lt.s32.totalorder %s1156_s21, 7  ;;  %1331 = vset.pattern.permute.xlu1 %v1491_v0  ;;  %1330 = vset.pattern.permute.xlu0 %v1492_v1  ;;  %vm375_vm0 = vcmask 261120   ;;  %s349_s17 = sld [smem:[#allocation2]]  ;;  %vm408_vm1 = vcmask 130112   ;;  %vm424_vm4 = vcmask 130048  }
  0x3c   : > { %v1711_v32 = vand.u32 127, %v386_v31  ;;  %v400_v35 = vshrl.u32 %v386_v31, 7  ;;  %s1496_s22 = smov 16   ;;  %s331_s20 = scalar_lea.vmem [#allocation6], %s1154_s12 }
  0x3d   : > { %s1915_s21 = smov (!%p333_p11, %s1156_s21), 7  ;;  %p1907_p12 = scmp.ne.s32.totalorder %s1904_s14, 0 }
  0x3e   : > { %s1209_s23 = sshll.u32 %s1915_s21, 4  ;;  %s1160_s13 = sshll.u32 %s1915_s21, 3  ;;  %v403_v36 = vadd.s32 4294967288, %v1711_v32  ;;  %v401_v42 = vsub.s32 %v1711_v32, %v400_v35 }
  0x3f   : > { %s1663_s16 = scalar_lea.vmem %s1893_s0, %s1209_s23  ;;  %s343_s9 = scalar_lea.vmem %s1894_s1, %s1160_s13 }
  0x40   : > { %v1669_v3 = vld [vmem:[%s1663_s16 + $0x10] sm:$0xff]  ;;  %v1672_v4 = vld [vmem:[%s1663_s16] sm:$0xff]  ;;  %v1677_v7 = vld [vmem:[%s1663_s16 + $0x18] sm:$0xff]  ;;  %v406_v43 = vsub.s32 %v403_v36, %v400_v35  ;;  %s1495_s13 = smov 48   ;;  %s1497_s21 = smov [#allocation6]  }
  0x41   : > { %v520_v5 = vmul.f32 %v1669_v3, %v1161_v2  ;;  %v373_v6 = vmul.f32 %v1161_v2, %v1672_v4  ;;  %v1680_v8 = vld [vmem:[%s1663_s16 + $0x8] sm:$0xff]  ;;  %v521_v9 = vmul.f32 %v1677_v7, %v1161_v2  ;;  %v385_v15 = vld [vmem:[%s343_s9] sm:$0xff]  ;;  %v1700_v20 = vld [vmem:[%s1663_s16 + $0x38] sm:$0xff]  ;;  %v382_v37 = vstv %s349_s17  ;;  %s1424_s23 = sshll.u32 %s1497_s21, 4  ;;  %s1425_s23 = int_to_ptr.vmem [resolvable:$false] %s1424_s23 }
  0x42   : > { %v374_v10 = vmul.f32 %v1161_v2, %v1680_v8  ;;  %v1692_v16 = vld [vmem:[%s1663_s16 + $0x20] sm:$0xff]  ;;  %v1695_v17 = vld [vmem:[%s1663_s16 + $0x28] sm:$0xff]  ;;  %v789_v23 = vmul.f32 %v1700_v20, %v1161_v2  ;;  %v1176_v26 = vld [vmem:[%s343_s9 + $0x10] sm:$0xff]  ;;  %v444_v31 = vpack.c.bf16 %v1680_v8, %v1672_v4  ;;  %v579_v4 = vpack.c.bf16 %v1677_v7, %v1669_v3  ;;  %s1426_s24 = scalar_lea.vmem %s1425_s23, 1024 }
  0x43   : > { %v522_v11 = vsel %vm375_vm0, %v520_v5, 0.0  ;;  %v376_v12 = vsel %vm375_vm0, %v373_v6, 0.0  ;;  %v525_v13 = vsel %vm375_vm0, %v521_v9, 0.0  ;;  %v654_v18 = vmul.f32 %v1692_v16, %v1161_v2  ;;  %v1168_v25 = vld [vmem:[%s343_s9 + $0x8] sm:$0xff]  ;;  %v1184_v27 = vld [vmem:[%s343_s9 + $0x18] sm:$0xff]  ;;  %v1707_v28 = vld [vmem:[%s1663_s16 + $0x30] sm:$0xff] }
  0x44   : > { %523 = vadd.xlane.f32.xlu1 %v522_v11  ;;  %377 = vadd.xlane.f32.xlu0 %v376_v12  ;;  %v379_v14 = vsel %vm375_vm0, %v374_v10, 0.0  ;;  %v655_v19 = vmul.f32 %v1695_v17, %v1161_v2  ;;  %v793_v24 = vsel %vm375_vm0, %v789_v23, 0.0  ;;  %v788_v29 = vmul.f32 %v1707_v28, %v1161_v2  ;;  %s1494_s16 = smov 80  }
  0x45   : > { %v656_v21 = vsel %vm375_vm0, %v654_v18, 0.0  ;;  %1232 = vmatprep.subr.bf16.mxu1 %v444_v31 }
  0x46   : > { %v659_v22 = vsel %vm375_vm0, %v655_v19, 0.0  ;;  %v790_v30 = vsel %vm375_vm0, %v788_v29, 0.0  ;;  %1233 = vmatpush3.bf16.msra.mxu1 %v444_v31 }
  0x47   : > { %1238 = vmatprep.subr.bf16.mxu1 %v579_v4 }
  0x48   : > { %526 = vadd.xlane.f32.xlu1 %v525_v13  ;;  %380 = vadd.xlane.f32.xlu0 %v379_v14 }
  0x59   : > { %393 = vperm.xlu1 %1331, %v385_v15  }
  0x5d   : > { %1332 = vset.pattern.permute.xlu1 %v1492_v1 }
  0x5e   : > { %389 = vperm.xlu0 %1330, %v385_v15  }
  0x7d   : > { %657 = vadd.xlane.f32.xlu1 %v656_v21  ;;  %660 = vadd.xlane.f32.xlu0 %v659_v22 }
  0x81   : > { %794 = vadd.xlane.f32.xlu0 %v793_v24 }
  0x8e   : > { %533 = vperm.xlu1 %1332, %v1168_v25  }
  0x92   : > { %1333 = vset.pattern.permute.xlu1 %v1491_v0 }
  0x93   : > { %537 = vperm.xlu1 %1333, %v1168_v25  }
  0x97   : > { %667 = vperm.xlu0 %1330, %v1176_v26  }
  0x9b   : > { %1334 = vset.pattern.permute.xlu0 %v1491_v0 }
  0x9c   : > { %671 = vperm.xlu0 %1334, %v1176_v26  }
  0xa0   : > { %1335 = vset.pattern.permute.xlu0 %v1492_v1 }
  0xa1   : > { %801 = vperm.xlu0 %1335, %v1184_v27  }
  0xa5   : > { %1366 = vset.pattern.permute.xlu0 %v1491_v0 }
  0xb7   : > { %791 = vadd.xlane.f32.xlu1 %v790_v30 }
  0xc8   : > { %805 = vperm.xlu1 %1333, %v1184_v27  }
  0xd1   : > { %v524_v33 = vpop.xlane.xlu1 %523  ;;  %v378_v34 = vpop.xlane.xlu0 %377 }
  0xd2   : > { %v383_v39 = vadd.f32 %v382_v37, %v378_v34  ;;  %v528_v54 = vadd.f32 %v524_v33, %v382_v37 }
  0xd4   : > { %v402_v44 = vrot.slane %v383_v39, %v401_v42  ;;  %v546_v58 = vrot.slane %v528_v54, %v401_v42 }
  0xd5   : > { %v527_v38 = vpop.xlane.xlu1 %526  ;;  %v381_v40 = vpop.xlane.xlu0 %380 }
  0xd6   : > { %v384_v41 = vadd.f32 %v382_v37, %v381_v40  ;;  %v529_v52 = vadd.f32 %v527_v38, %v382_v37 }
  0xd8   : > { %v407_v45 = vrot.slane %v384_v41, %v406_v43  ;;  %v550_v56 = vrot.slane %v529_v52, %v406_v43 }
  0xd9   : > { %v1715_v46 = vpop.permute.xlu1 %393 }
  0xda   : > { %v409_v48 = vsel %vm408_vm1, %v407_v45, %v402_v44  ;;  %vm395_vm2 = vcmp.lt.s32.totalorder %v1711_v32, %v1715_v46  ;;  %v551_v60 = vsel %vm408_vm1, %v550_v56, %v546_v58  ;;  %vm439_vm15 = vcmp.eq.s32.totalorder %v1711_v32, %v1715_v46 }
  0xdb   : > { %v713_v56 = vpack.c.bf16 %v1695_v17, %v1692_v16 }
  0xdd   : > { %v1717_v47 = vpop.permute.xlu0 %389 }
  0xde   : > { %vm391_vm3 = vcmp.ge.s32.totalorder %v1711_v32, %v1717_v47 }
  0xdf   : > { %vm396_vm5 = vmand %vm391_vm3, %vm395_vm2 }
  0xe0   : > { %v423_v49 = vsel %vm396_vm5, %v409_v48, -1e+09 }
  0xe1   : > { %v425_v50 = vsel %vm424_vm4, %v423_v49, -inf }
  0xe2   : > { %426 = vmax.xlane.f32.xlu0 %v425_v50 }
 0x10a   : > { %v658_v51 = vpop.xlane.xlu1 %657  ;;  %v661_v53 = vpop.xlane.xlu0 %660 }
 0x10b   : > { %v662_v61 = vadd.f32 %v658_v51, %v382_v37  ;;  %v663_v62 = vadd.f32 %v661_v53, %v382_v37  ;;  %v1493_v51 = vmov 0.0  }
 0x10c   : > { %v1163_v3 = vsel %vm439_vm15, 1.0, %v1493_v51 }
 0x10d   : > { %v680_v2 = vrot.slane %v662_v61, %v401_v42  ;;  %v684_v5 = vrot.slane %v663_v62, %v406_v43  ;;  %v443_v54 = vpack.c.bf16 %v1163_v3, %v1163_v3  ;;  %v847_v62 = vpack.c.bf16 %v1700_v20, %v1707_v28 }
 0x10e   : > { %v1725_v55 = vpop.permute.xlu1 %533  ;;  %v795_v57 = vpop.xlane.xlu0 %794 }
 0x10f   : > { %vm535_vm6 = vcmp.ge.s32.totalorder %v1711_v32, %v1725_v55  ;;  %v685_v9 = vsel %vm408_vm1, %v684_v5, %v680_v2  ;;  %v797_v12 = vadd.f32 %v795_v57, %v382_v37  ;;  %vm571_vm3 = vcmp.eq.s32.totalorder %v1711_v32, %v1725_v55 }
 0x110   : > { %v1169_v16 = vsel %vm571_vm3, 1.0, %v1493_v51 }
 0x111   : > { %v818_v18 = vrot.slane %v797_v12, %v406_v43 }
 0x112   : > { %v1727_v59 = vpop.permute.xlu1 %537 }
 0x113   : > { %vm539_vm7 = vcmp.lt.s32.totalorder %v1711_v32, %v1727_v59  ;;  %vm574_vm2 = vcmp.eq.s32.totalorder %v1711_v32, %v1727_v59 }
 0x114   : > { %vm540_vm8 = vmand %vm535_vm6, %vm539_vm7  ;;  %v1170_v58 = vsel %vm574_vm2, 1.0, %v1493_v51 }
 0x115   : > { %v559_v63 = vsel %vm540_vm8, %v551_v60, -1e+09  ;;  %v578_v61 = vpack.c.bf16 %v1170_v58, %v1170_v58 }
 0x116   : > { %v1734_v0 = vpop.permute.xlu0 %667  ;;  %v560_v1 = vsel %vm424_vm4, %v559_v63, -inf }
 0x117   : > { %561 = vmax.xlane.f32.xlu1 %v560_v1  ;;  %vm669_vm9 = vcmp.ge.s32.totalorder %v1711_v32, %v1734_v0  ;;  %vm705_vm6 = vcmp.eq.s32.totalorder %v1711_v32, %v1734_v0 }
 0x118   : > { %v1177_v1 = vsel %vm705_vm6, 1.0, %v1493_v51 }
 0x11b   : > { %v1737_v6 = vpop.permute.xlu0 %671 }
 0x11c   : > { %vm673_vm10 = vcmp.lt.s32.totalorder %v1711_v32, %v1737_v6  ;;  %vm708_vm5 = vcmp.eq.s32.totalorder %v1711_v32, %v1737_v6 }
 0x11d   : > { %vm674_vm11 = vmand %vm669_vm9, %vm673_vm10  ;;  %v1178_v59 = vsel %vm708_vm5, 1.0, %v1493_v51  ;;  %vm513_vm9 = vcmask 392192   ;;  %vm515_vm10 = vcmask 654336  }
 0x11e   : > { %v693_v10 = vsel %vm674_vm11, %v685_v9, -1e+09  ;;  %v712_v5 = vpack.c.bf16 %v1178_v59, %v1178_v59  ;;  %vm969_vm11 = vcmask 916480  }
 0x11f   : > { %v694_v11 = vsel %vm424_vm4, %v693_v10, -inf }
 0x120   : > { %695 = vmax.xlane.f32.xlu0 %v694_v11  ;;  %v1745_v14 = vpop.permute.xlu0 %801 }
 0x121   : > { %vm803_vm12 = vcmp.ge.s32.totalorder %v1711_v32, %v1745_v14  ;;  %vm839_vm8 = vcmp.eq.s32.totalorder %v1711_v32, %v1745_v14  ;;  %v1368_v14 = vld [vmem:[%s1898_s5 + $0x8] sm:$0xff]  }
 0x122   : > { %v1185_v9 = vsel %vm839_vm8, 1.0, %v1493_v51 }
 0x144   : > { %v792_v13 = vpop.xlane.xlu1 %791 }
 0x145   : > { %v796_v15 = vadd.f32 %v792_v13, %v382_v37 }
 0x147   : > { %v814_v19 = vrot.slane %v796_v15, %v401_v42 }
 0x148   : > { %v1749_v21 = vpop.permute.xlu1 %805 }
 0x149   : > { %vm807_vm13 = vcmp.lt.s32.totalorder %v1711_v32, %v1749_v21  ;;  %v819_v22 = vsel %vm408_vm1, %v818_v18, %v814_v19  ;;  %vm436_vm1 = vcmp.eq.s32.totalorder %v1711_v32, %v1717_v47  ;;  %vm842_vm7 = vcmp.eq.s32.totalorder %v1711_v32, %v1749_v21  ;;  %v1367_v32 = vld [vmem:[%s1898_s5] sm:$0xff]  }
 0x14a   : > { %vm808_vm14 = vmand %vm803_vm12, %vm807_vm13  ;;  %v1162_v52 = vsel %vm436_vm1, 1.0, %v1493_v51  ;;  %v1186_v0 = vsel %vm842_vm7, 1.0, %v1493_v51  ;;  %1256 = vmatprep.subr.bf16.mxu0 %v1367_v32 }
 0x14b   : > { %v827_v23 = vsel %vm808_vm14, %v819_v22, -1e+09  ;;  %v846_v11 = vpack.c.bf16 %v1186_v0, %v1186_v0  ;;  %1257 = vmatpush3.bf16.msra.mxu0 %v1367_v32 }
 0x14c   : > { %v828_v24 = vsel %vm424_vm4, %v827_v23, -inf  ;;  %1258 = vmatprep.subr.bf16.mxu0 %v1368_v14 }
 0x14d   : > { %829 = vmax.xlane.f32.xlu0 %v828_v24 }
 0x14f   : > { %1259 = vmatpush3.bf16.msra.mxu0 %v1368_v14 }
 0x16f   : > { %v427_v25 = vpop.xlane.xlu0 %426 }
 0x170   : > { %v428_v26 = vsub.f32 %v423_v49, %v427_v25 }
 0x172   : > { %v429_v27 = vmul.f32 1.442695, %v428_v26 }
 0x174   : > { %1374 = vpow2.f32 %v429_v27  ;;  %v1369_v27 = vld [vmem:[%s1898_s5 + $0x10] sm:$0xff]  }
 0x175   : > { %1260 = vmatprep.subr.bf16.mxu0 %v1369_v27 }
 0x176   : > { %1261 = vmatpush3.bf16.msra.mxu0 %v1369_v27 }
 0x17e   : > { %v1375_v29 = vpop.eup %1374 }
 0x17f   : > { %v431_v30 = vsel %vm424_vm4, %v1375_v29, 0.0 }
 0x180   : > { %432 = vadd.xlane.f32.xlu0 %v431_v30  ;;  %v1370_v30 = vld [vmem:[%s1898_s5 + $0x18] sm:$0xff]  }
 0x181   : > { %1262 = vmatprep.subr.bf16.mxu0 %v1370_v30 }
 0x182   : > { %1263 = vmatpush3.bf16.msra.mxu0 %v1370_v30 }
 0x1a4   : > { %v562_v33 = vpop.xlane.xlu1 %561 }
 0x1a5   : > { %v563_v34 = vsub.f32 %v559_v63, %v562_v33 }
 0x1a7   : > { %v564_v35 = vmul.f32 1.442695, %v563_v34 }
 0x1a9   : > { %1376 = vpow2.f32 %v564_v35  ;;  %v1371_v35 = vld [vmem:[%s1898_s5 + $0x20] sm:$0xff]  }
 0x1aa   : > { %1264 = vmatprep.subr.bf16.mxu0 %v1371_v35 }
 0x1ab   : > { %1265 = vmatpush3.bf16.msra.mxu0 %v1371_v35 }
 0x1ad   : > { %v696_v36 = vpop.xlane.xlu0 %695 }
 0x1ae   : > { %v697_v37 = vsub.f32 %v693_v10, %v696_v36  ;;  %v1372_v36 = vld [vmem:[%s1898_s5 + $0x28] sm:$0xff]  }
 0x1af   : > { %1266 = vmatprep.subr.bf16.mxu0 %v1372_v36 }
 0x1b0   : > { %v698_v38 = vmul.f32 1.442695, %v697_v37  ;;  %1267 = vmatpush3.bf16.msra.mxu0 %v1372_v36  ;;  %v1373_v37 = vld [vmem:[%s1898_s5 + $0x30] sm:$0xff]  }
 0x1b1   : > { %1268 = vmatprep.subr.bf16.mxu0 %v1373_v37 }
 0x1b2   : > { %1378 = vpow2.f32 %v698_v38 }
 0x1b3   : > { %v1377_v39 = vpop.eup %1376 }
 0x1b4   : > { %v566_v40 = vsel %vm424_vm4, %v1377_v39, 0.0  ;;  %1269 = vmatpush3.bf16.msra.mxu0 %v1373_v37 }
 0x1b5   : > { %567 = vadd.xlane.f32.xlu0 %v566_v40 }
 0x1bc   : > { %v1379_v41 = vpop.eup %1378 }
 0x1bd   : > { %v700_v42 = vsel %vm424_vm4, %v1379_v41, 0.0 }
 0x1be   : > { %701 = vadd.xlane.f32.xlu1 %v700_v42 }
 0x1da   : > { %v830_v8 = vpop.xlane.xlu0 %829 }
 0x1db   : > { %v831_v43 = vsub.f32 %v827_v23, %v830_v8 }
 0x1dd   : > { %v832_v44 = vmul.f32 1.442695, %v831_v43 }
 0x1df   : > { %1380 = vpow2.f32 %v832_v44 }
 0x1e9   : > { %v1381_v45 = vpop.eup %1380 }
 0x1ea   : > { %v834_v48 = vsel %vm424_vm4, %v1381_v45, 0.0 }
 0x1eb   : > { %835 = vadd.xlane.f32.xlu0 %v834_v48  ;;  %v1173_v48 = vld [vmem:[%s1653_s18 + $0x8] sm:$0xff] }
 0x20d   : > { %v433_v49 = vpop.xlane.xlu0 %432 }
 0x20e   : > { %1382 = vrcp.f32 %v433_v49 }
 0x218   : > { %v1383_v50 = vpop.eup %1382 }
 0x219   : > { %v435_v7 = vmul.f32 %v1383_v50, %v1375_v29 }
 0x21b   : > { %v442_v53 = vpack.c.bf16 %v1162_v52, %v435_v7 }
 0x21d   : > { %1234 = vmatprep.mubr.msk.bf16.mxu1 %vm424_vm4, %v442_v53 }
 0x21e   : > { %1235 = vmatmul.mubr.msk.bf16.vlgmr.msra.gmra.mrb[0].mxu1 %vm424_vm4, %v443_v54 }
 0x21f   : > { %1239 = vmatpush3.bf16.msra.mxu1 %v579_v4 }
 0x220   : > { %1244 = vmatprep.subr.bf16.mxu1 %v713_v56 }
 0x242   : > { %v568_v46 = vpop.xlane.xlu0 %567 }
 0x243   : > { %1384 = vrcp.f32 %v568_v46 }
 0x24b   : > { %v702_v47 = vpop.xlane.xlu1 %701 }
 0x24c   : > { %1386 = vrcp.f32 %v702_v47 }
 0x24d   : > { %v1385_v57 = vpop.eup %1384 }
 0x24e   : > { %v570_v60 = vmul.f32 %v1385_v57, %v1377_v39 }
 0x250   : > { %v577_v17 = vpack.c.bf16 %v1169_v16, %v570_v60  ;;  %v1181_v16 = vld [vmem:[%s1653_s18 + $0x10] sm:$0xff] }
 0x252   : > { %1240 = vmatprep.mubr.msk.bf16.mxu1 %vm424_vm4, %v577_v17  ;;  %v1189_v17 = vld [vmem:[%s1653_s18 + $0x18] sm:$0xff] }
 0x253   : > { %1241 = vmatmul.mubr.msk.bf16.vlgmr.msra.gmra.mrb[4].mxu1 %vm424_vm4, %v578_v61 }
 0x254   : > { %1245 = vmatpush3.bf16.msra.mxu1 %v713_v56 }
 0x255   : > { %1250 = vmatprep.subr.bf16.mxu1 %v847_v62 }
 0x256   : > { %v1387_v55 = vpop.eup %1386 }
 0x257   : > { %v704_v63 = vmul.f32 %v1387_v55, %v1379_v41 }
 0x259   : > { %v711_v2 = vpack.c.bf16 %v1177_v1, %v704_v63 }
 0x25b   : > { %1246 = vmatprep.mubr.msk.bf16.mxu1 %vm424_vm4, %v711_v2 }
 0x25c   : > { %1247 = vmatmul.mubr.msk.bf16.vlgmr.msra.gmra.mrb[8].mxu1 %vm424_vm4, %v712_v5 }
 0x25d   : > { %1251 = vmatpush3.bf16.msra.mxu1 %v847_v62 }
 0x278   : > { %v836_v20 = vpop.xlane.xlu0 %835 }
 0x279   : > { %1388 = vrcp.f32 %v836_v20 }
 0x283   : > { %v1389_v28 = vpop.eup %1388 }
 0x284   : > { %v838_v6 = vmul.f32 %v1389_v28, %v1381_v45  ;;  %v499_v45 = vld [vmem:[%s1653_s18] sm:$0xff] }
 0x286   : > { %v845_v10 = vpack.c.bf16 %v1185_v9, %v838_v6 }
 0x288   : > { %1252 = vmatprep.mubr.msk.bf16.mxu1 %vm424_vm4, %v845_v10 }
 0x289   : > { %1253 = vmatmul.mubr.msk.bf16.vlgmr.msra.gmra.mrb[12].mxu1 %vm424_vm4, %v846_v11 }
 0x2f1   : > { %v1236_v12 = vpop.f32.mrb[0].mxu1 }
 0x2f2   : > { %v485_v13 = vpop.f32.mrb[1].mxu1 }
 0x2f3   : > { %v1237_v15 = vpop.f32.mrb[2].mxu1 }
 0x2f4   : > { %v488_v18 = vpop.f32.mrb[3].mxu1 }
 0x326   : > { %v1242_v19 = vpop.f32.mrb[4].mxu1 }
 0x327   : > { %v1336_v22 = vpack.i.bf16 %v1242_v19, %v1236_v12  ;;  %v620_v21 = vpop.f32.mrb[5].mxu1 }
 0x328   : > { %v1341_v23 = vpack.i.bf16 %v620_v21, %v485_v13  ;;  %v1243_v24 = vpop.f32.mrb[6].mxu1  ;;  %v1190_v13 = vld [vmem:[%s1899_s6] ss:$0 sm:$0xff] }
 0x329   : > { %1337 = vrot.lane.b32.xlu1 %v1336_v22, %s1494_s16  ;;  %v623_v25 = vpop.f32.mrb[7].mxu1 }
 0x32a   : > { %v1346_v26 = vpack.i.bf16 %v623_v25, %v488_v18 }
 0x32c   : > { %1347 = vrot.lane.b32.xlu0 %v1346_v26, %s1495_s13 }
 0x32d   : > { %1342 = vrot.lane.b32.xlu1 %v1341_v23, %s1496_s22 }
 0x32f   : > { %v1248_v29 = vpop.f32.mrb[8].mxu1 }
 0x330   : > { %v754_v31 = vpop.f32.mrb[9].mxu1 }
 0x331   : > { %v1249_v33 = vpop.f32.mrb[10].mxu1 }
 0x332   : > { %v757_v34 = vpop.f32.mrb[11].mxu1 }
 0x35c   : > { %v1254_v38 = vpop.f32.mrb[12].mxu1 }
 0x35d   : > { %v1361_v39 = vpack.i.bf16 %v1254_v38, %v1248_v29  ;;  %v888_v40 = vpop.f32.mrb[13].mxu1 }
 0x35e   : > { %v1351_v41 = vpack.i.bf16 %v888_v40, %v754_v31  ;;  %v1255_v42 = vpop.f32.mrb[14].mxu1 }
 0x35f   : > { %v891_v4 = vpop.f32.mrb[15].mxu1 }
 0x360   : > { %v1356_v8 = vpack.i.bf16 %v891_v4, %v757_v34  ;;  %1352 = vrot.lane.b32.xlu1 %v1351_v41, %s1496_s22  ;;  %s1210_s22 = sshll.u32 %s1564_s4, 9  ;;  %s1037_s4 = scalar_lea.sflag [#allocation5], %s1647_s10 }
 0x361   : > { %s1846_s9 = scalar_lea.hbm %s1900_s7, %s1210_s22 }
 0x362   : > { %1357 = vrot.lane.b32.xlu0 %v1356_v8, %s1495_s13  ;;  %s1050_s13 = sshll.u32 %s331_s20, 4  ;;  %s1840_s13 = int_to_ptr.vmem [resolvable:$true] %s1050_s13 }
 0x363   : > { %s1420_s17 = scalar_lea.vmem %s1840_s13, 512  ;;  %p1427_p10 = scmp.lt.s32.totalorder %s1840_s13, %s1425_s23 }
 0x364   : > { %1362 = vrot.lane.b32.xlu1 %v1361_v39, %s1494_s16  ;;  %p1421_p6 = scmp.ne.s32.totalorder %s1840_s13, %s1420_s17  ;;  %p1428_p0 = scmp.lt.s32.totalorder %s1426_s24, %s1420_s17 }
 0x366   : > { %p1422_p13 = pnand %p1421_p6, %p1907_p12  ;;  %p1429_p2 = por %p1428_p0, %p1427_p10 }
 0x368   : > { %p1423_p8 = pneg %p1422_p13 }
 0x36a   : > { %p1430_p4 = pnand %p1429_p2, %p1423_p8 }
 0x39b   : > { %v1338_v43 = vpop.permute.xlu1 %1337 }
 0x39c   : > { %v1340_v52 = vunpack.i.h.bf16 %v1338_v43  ;;  %v1339_v53 = vunpack.i.l.bf16 %v1338_v43 }
 0x39e   : > { %v1348_v44 = vpop.permute.xlu0 %1347 }
 0x39f   : > { %v1343_v49 = vpop.permute.xlu1 %1342  ;;  %v1350_v3 = vunpack.i.h.bf16 %v1348_v44  ;;  %v1349_v7 = vunpack.i.l.bf16 %v1348_v44 }
 0x3a0   : > { %v1345_v50 = vunpack.i.h.bf16 %v1343_v49  ;;  %v1344_v51 = vunpack.i.l.bf16 %v1343_v49 }
 0x3a2   : > { %v648_v54 = vsel %vm424_vm4, %v1173_v48, %v1345_v50  ;;  %v512_v56 = vsel %vm424_vm4, %v499_v45, %v1344_v51 }
 0x3a3   : > { %v514_v46 = vsel %vm513_vm9, %v512_v56, %v1349_v7  ;;  %v649_v47 = vsel %vm513_vm9, %v648_v54, %v1350_v3 }
 0x3a4   : > { %v516_v57 = vsel %vm515_vm10, %v514_v46, %v1339_v53  ;;  %v650_v58 = vsel %vm515_vm10, %v649_v47, %v1340_v52 }
 0x3a5   : > { %v919_v60 = vpack.c.bf16 %v650_v58, %v516_v57 }
 0x3a7   : > { %1270 = vmatprep.mubr.msk.bf16.mxu0 %vm969_vm11, %v919_v60 }
 0x3d2   : > { %v1353_v61 = vpop.permute.xlu1 %1352 }
 0x3d3   : > { %v1355_v62 = vunpack.i.h.bf16 %v1353_v61  ;;  %v1354_v55 = vunpack.i.l.bf16 %v1353_v61 }
 0x3d4   : > { %v1358_v59 = vpop.permute.xlu0 %1357 }
 0x3d5   : > { %v916_v63 = vsel %vm424_vm4, %v1189_v17, %v1355_v62  ;;  %v782_v1 = vsel %vm424_vm4, %v1181_v16, %v1354_v55  ;;  %v1360_v2 = vunpack.i.h.bf16 %v1358_v59  ;;  %v1359_v5 = vunpack.i.l.bf16 %v1358_v59 }
 0x3d6   : > { %v1363_v20 = vpop.permute.xlu1 %1362 }
 0x3d7   : > { %v917_v28 = vsel %vm513_vm9, %v916_v63, %v1360_v2  ;;  %v783_v0 = vsel %vm513_vm9, %v782_v1, %v1359_v5  ;;  %v1365_v6 = vunpack.i.h.bf16 %v1363_v20  ;;  %v1364_v9 = vunpack.i.l.bf16 %v1363_v20 }
 0x3d9   : > { %v784_v10 = vsel %vm515_vm10, %v783_v0, %v1364_v9  ;;  %v918_v11 = vsel %vm515_vm10, %v917_v28, %v1365_v6 }
 0x3da   : > { %v920_v12 = vpack.c.bf16 %v918_v11, %v784_v10 }
 0x3dc   : > { %1271 = vmatmul.mubr.msk.bf16.vlgmr.msra.gmra.mrb[0].mxu0 %vm969_vm11, %v920_v12 }
 0x4af   : > { %v1272_v15 = vpop.f32.mrb[0].mxu0 }
 0x4b0   : > { %v1019_v18 = vadd.f32 %v1272_v15, %v1190_v13  ;;  %v1010_v19 = vpop.f32.mrb[1].mxu0 }
 0x4b1   : > { %v1011_v22 = vadd.f32 %v1190_v13, %v1010_v19  ;;  %v1273_v21 = vpop.f32.mrb[2].mxu0 }
 0x4b2   : > { %v1027_v32 = vmax.f32 %v1019_v18, 0.0  ;;  %v1022_v14 = vadd.f32 %v1273_v21, %v1190_v13  ;;  %v1013_v23 = vpop.f32.mrb[3].mxu0 }
 0x4b3   : > { %v1025_v24 = vmax.f32 %v1011_v22, 0.0  ;;  %v1014_v25 = vadd.f32 %v1190_v13, %v1013_v23 }
 0x4b4   : > { %1201 = vst.msk [vmem:[%s331_s20 + $0x10] sm:$0xff] %vm375_vm0, %v1027_v32  ;;  %v1028_v26 = vmax.f32 %v1022_v14, 0.0 }
 0x4b5   : > { %1029 = vst.msk [vmem:[%s331_s20] sm:$0xff] %vm375_vm0, %v1025_v24  ;;  %v1026_v27 = vmax.f32 %v1014_v25, 0.0 }
 0x4b6   : > { %1202 = vst.msk [vmem:[%s331_s20 + $0x18] sm:$0xff] %vm375_vm0, %v1028_v26 }
 0x4b7   : > { %1200 = vst.msk [vmem:[%s331_s20 + $0x8] sm:$0xff] %vm375_vm0, %v1026_v27 }
 0x4b8   : > { %1433 = shalt.err (!%p1430_p4)
}
 0x4b9   : > { %s1434_s25 = scalar_lea.hbm %s1846_s9, 512  ;;  %s1438_s16 = scalar_lea.hbm %s1900_s7, 1024 }
 0x4ba   : > { %p1435_p5 = scmp.ne.s32.totalorder %s1846_s9, %s1434_s25  ;;  %p1439_p1 = scmp.lt.u32.totalorder %s1846_s9, %s1900_s7 }
 0x4bb   : > { %p1440_p3 = scmp.lt.u32.totalorder %s1438_s16, %s1434_s25  ;;  %p1442_p6 = scmp.lt.u32.totalorder %s1434_s25, %s1846_s9 }
 0x4bc   : > { %p1436_p7 = pnand %p1435_p5, %p1907_p12 }
 0x4bd   : > { %p1441_p11 = por %p1440_p3, %p1439_p1 }
 0x4be   : > { %p1437_p9 = pneg %p1436_p7 }
 0x4bf   : > { %p1443_p13 = por %p1442_p6, %p1441_p11 }
 0x4c1   : > { %p1444_p8 = pnand %p1443_p13, %p1437_p9 }
 0x4c3   : > { %1447 = shalt.err (!%p1444_p8)
}
 0x4c4   : > { %s1498_s12 = smov 128   ;;  %s1499_s30 = smov 8  }
 0x4c5   : > { %1276 = dma.vmem_to_hbm [thread:$0]  (%p1907_p12), %s1840_s13, 512, %s1846_s9, %s1037_s4, %s1498_s12, %s1498_s12, %s1499_s30  }
 0x4c6 PF: > { %s1065_s17 = sand.u32 1, %s1474_s26   ;;  %p1908_p10 = scmp.ne.s32.totalorder %s1905_s15, 0 }
 0x4c7   : > { %p1909_p0 = scmp.ge.s32.totalorder %s1486_s29, 2  ;;  %s1066_s21 = scalar_lea.sflag [#allocation5], %s1065_s17 }
 0x4c9   : > { %p1283_p2 = pnand %p1909_p0, %p1908_p10 }
 0x4cb   : > { %1469 = dma.done.wait (!%p1283_p2), %s1066_s21, 512  }
 0x4cc   : > { %1471 = vsyncadd (!%p1283_p2), %s1066_s21, 4294966784  ;;  %p21_p4 = scmp.ge.s32.totalorder %s1568_s8, 4   ;;  %s1910_s26 = smov %s1478_s27 }
 0x4cd   : > { %s1911_s27 = smov %s1482_s28  ;;  %s1912_s28 = smov %s1580_s11 }
 0x4ce   : > { %s1913_s29 = smov %s1568_s8  ;;  %23 = sbr.rel (!%p21_p4) target bundleno = 7 (0x7), region = 111 }
 0x4d5   :  { %1071 = vsyncpa [#allocation4], 1 }
 0x4d6   :  { %1073 = vsyncpa [#allocation4 + $0x1], 1 }
 0x4d7   :  { %1074 = vsyncpa [#allocation5], 1 }
 0x4d8   :  { %1076 = vsyncpa [#allocation5 + $0x1], 1 }

</bundles_post_ra>
